<compile_context>
chip_gen: v6e
topology: v6e:2x2x1
jax: 0.10.0
libtpu: 0.0.40
codegen_flags: <defaults>
</compile_context>

<pallas_src>
import functools
import math

import jax
import jax.numpy as jnp
from jax.experimental import pallas as pl
from jax.experimental.pallas import tpu as pltpu


# --------------------------- generation-aware VMEM budget ---------------------------

def _vmem_phys_bytes():
    try:
        info = pltpu.get_tpu_info()
        v = getattr(info, "vmem_capacity_bytes", None)
        if v:
            return int(v)
    except Exception:
        pass
    return 64 * 1024 * 1024  # conservative fallback (v7x-sized)


_VMEM_PHYS = _vmem_phys_bytes()
# ~48 MiB on v7x (64 MiB physical), ~96 MiB on v5e/v6e (128 MiB physical)
_VMEM_LIMIT = max(32 * 1024 * 1024, int(_VMEM_PHYS * 0.75))
# budget used by the tile pickers (headroom for Mosaic internal scratch / estimate slack)
_TILE_BUDGET = int(_VMEM_LIMIT * 0.8)

_NEG_INF = -1.0e30


def _cparams(*sems):
    return pltpu.CompilerParams(dimension_semantics=tuple(sems),
                                vmem_limit_bytes=_VMEM_LIMIT)


def _sublane(dtype):
    # full sublane packing: 8 rows for 4-byte, 16 for 2-byte, 32 for 1-byte dtypes
    return {4: 8, 2: 16, 1: 32}[jnp.dtype(dtype).itemsize]


def _round_up(x, m):
    return ((x + m - 1) // m) * m


def _pad2d(a, rows, cols):
    pr = rows - a.shape[0]
    pc = cols - a.shape[1]
    if pr or pc:
        a = jnp.pad(a, ((0, pr), (0, pc)))
    return a


# ----------------------------- RMSNorm (standalone) -----------------------------

def _rmsnorm_kernel(x_ref, w_ref, o_ref, *, eps, inv_dim):
    xf = x_ref[...].astype(jnp.float32)
    ms = jnp.sum(xf * xf, axis=-1, keepdims=True) * inv_dim   # sum * 1/dim, no divide
    xn = (xf * jax.lax.rsqrt(ms + eps)).astype(o_ref.dtype)   # cast-then-scale: matches torch
    o_ref[...] = xn * w_ref[...]


def rmsnorm(x, weight, eps):
    orig_shape = x.shape
    dim = orig_shape[-1]
    rows = math.prod(orig_shape[:-1]) if len(orig_shape) > 1 else 1
    x2d = x.reshape(rows, dim)
    w2d = weight.reshape(1, dim).astype(x.dtype)

    itm = jnp.dtype(x.dtype).itemsize
    sub = _sublane(x.dtype)
    rows_base = _round_up(rows, sub)
    tm = min(_round_up(512, sub), rows_base)
    while tm > sub and 4 * tm * dim * itm > _TILE_BUDGET:   # in + out, double-buffered
        tm = max(sub, tm // 2)
    rows_pad = _round_up(rows, tm)
    xp = _pad2d(x2d, rows_pad, dim)

    out = pl.pallas_call(
        functools.partial(_rmsnorm_kernel, eps=eps, inv_dim=1.0 / dim),
        out_shape=jax.ShapeDtypeStruct((rows_pad, dim), x.dtype),
        grid=(rows_pad // tm,),
        in_specs=[pl.BlockSpec((tm, dim), lambda i: (i, 0)),
                  pl.BlockSpec((1, dim), lambda i: (0, 0))],
        out_specs=pl.BlockSpec((tm, dim), lambda i: (i, 0)),
        compiler_params=_cparams("parallel"),
    )(xp, w2d)
    return out[:rows].reshape(orig_shape)


# ------------------- matmul (K-tiled, optional fused residual add) -------------------

def _matmul_kernel(x_ref, w_ref, o_ref, acc_ref):
    @pl.when(pl.program_id(2) == 0)
    def _():
        acc_ref[...] = jnp.zeros_like(acc_ref)

    acc_ref[...] += jnp.dot(x_ref[...], w_ref[...],
                            preferred_element_type=jnp.float32)

    @pl.when(pl.program_id(2) == pl.num_programs(2) - 1)
    def _():
        o_ref[...] = acc_ref[...].astype(o_ref.dtype)


def _matmul_res_kernel(x_ref, w_ref, r_ref, o_ref, acc_ref):
    @pl.when(pl.program_id(2) == 0)
    def _():
        acc_ref[...] = r_ref[...].astype(jnp.float32)       # residual seeds the accumulator

    acc_ref[...] += jnp.dot(x_ref[...], w_ref[...],
                            preferred_element_type=jnp.float32)

    @pl.when(pl.program_id(2) == pl.num_programs(2) - 1)
    def _():
        o_ref[...] = acc_ref[...].astype(o_ref.dtype)


def _matmul_tiles(rows, K, N, dtype, has_res):
    itm = jnp.dtype(dtype).itemsize
    sub = _sublane(dtype)
    rows_base = _round_up(rows, sub)

    def est(tm, tk, tn):
        b = 2 * tm * tk * itm          # x block (double buffered)
        b += 2 * tk * tn * itm         # weight block (double buffered)  <- now accounted
        b += 2 * tm * tn * itm         # output block
        b += tm * tn * 4               # f32 accumulator scratch
        if has_res:
            b += 2 * tm * tn * itm     # residual block
        return b

    # lane-dense output tiles; >=256-wide where possible for the 256x256 MXUs
    tn = min(N, 512) if N % 128 == 0 else N

    # contraction tile: full K when it fits, else the largest 128-multiple that does
    tm_probe = min(max(sub, 256), rows_base)
    tk, k_pad = K, K
    if K > 128 and est(tm_probe, K, tn) > _TILE_BUDGET:
        k_pad = _round_up(K, 128)
        tk = 128
        for cand in (2048, 1024, 512, 256):
            if k_pad % cand == 0 and est(tm_probe, cand, tn) <= _TILE_BUDGET:
                tk = cand
                break

    # row tile: as large as possible within budget (amortizes ~0.35us/step overhead)
    tm = min(_round_up(512, sub), rows_base)
    while tm > sub and est(tm, tk, tn) > _TILE_BUDGET:
        tm = max(sub, tm // 2)
    rows_pad = _round_up(rows, tm)
    return tm, tn, tk, rows_pad, k_pad


def matmul(x, w, residual=None):
    """(rows, K) @ (K, N) [+ residual] with a K reduction axis and f32 accumulator."""
    rows, K = x.shape
    Kw, N = w.shape
    assert K == Kw
    dtype = x.dtype
    has_res = residual is not None
    tm, tn, tk, rows_pad, k_pad = _matmul_tiles(rows, K, N, dtype, has_res)

    xp = _pad2d(x, rows_pad, k_pad)
    wp = _pad2d(w, k_pad, N)
    nm, nn, nk = rows_pad // tm, N // tn, k_pad // tk

    # Grid order: when K fits untiled (nk == 1), keep the bigger operand resident across
    # the inner space axis (Pallas skips the DMA when the block index is unchanged).
    w_elems = k_pad * N
    x_elems = rows_pad * k_pad
    if w_elems >= x_elems:
        grid = (nn, nm, nk)
        x_map = lambda j, i, k: (i, k)
        w_map = lambda j, i, k: (k, j)
        o_map = lambda j, i, k: (i, j)
    else:
        grid = (nm, nn, nk)
        x_map = lambda i, j, k: (i, k)
        w_map = lambda i, j, k: (k, j)
        o_map = lambda i, j, k: (i, j)

    in_specs = [pl.BlockSpec((tm, tk), x_map),
                pl.BlockSpec((tk, tn), w_map)]
    args = [xp, wp]
    if has_res:
        in_specs.append(pl.BlockSpec((tm, tn), o_map))
        args.append(_pad2d(residual, rows_pad, N))
        kernel = _matmul_res_kernel
    else:
        kernel = _matmul_kernel

    out = pl.pallas_call(
        kernel,
        out_shape=jax.ShapeDtypeStruct((rows_pad, N), dtype),
        grid=grid,
        in_specs=in_specs,
        out_specs=pl.BlockSpec((tm, tn), o_map),
        scratch_shapes=[pltpu.VMEM((tm, tn), jnp.float32)],
        compiler_params=_cparams("parallel", "parallel", "arbitrary"),
    )(*args)
    return out[:rows]


# ------------------- post-attention RMSNorm fused into SwiGLU -------------------

def _norm_swiglu_kernel(x_ref, g_ref, wg_ref, wu_ref, o_ref, xn_ref, *, eps, inv_dim):
    # Compute the RMSNorm only once per row tile (j == 0) into VMEM scratch and
    # reuse it across every intermediate-dim tile.
    @pl.when(pl.program_id(1) == 0)
    def _():
        xf = x_ref[...].astype(jnp.float32)
        ms = jnp.sum(xf * xf, axis=-1, keepdims=True) * inv_dim
        xn = (xf * jax.lax.rsqrt(ms + eps)).astype(xn_ref.dtype)
        xn_ref[...] = xn * g_ref[...]

    xn = xn_ref[...]                                         # input dtype -> native MXU path
    g = jnp.dot(xn, wg_ref[...], preferred_element_type=jnp.float32)
    u = jnp.dot(xn, wu_ref[...], preferred_element_type=jnp.float32)
    o_ref[...] = (g * jax.nn.sigmoid(g) * u).astype(o_ref.dtype)   # silu(g) * u


def norm_swiglu(x, gamma, wg, wu, eps):
    rows, K = x.shape
    N = wg.shape[1]
    dtype = x.dtype
    itm = jnp.dtype(dtype).itemsize
    sub = _sublane(dtype)
    rows_base = _round_up(rows, sub)

    tn = min(N, 512) if N % 128 == 0 else N

    def est(tm, tn_):
        b = 2 * tm * K * itm            # x block
        b += tm * K * itm               # xn scratch
        b += 2 * 2 * K * tn_ * itm      # two weight blocks (double buffered)
        b += 2 * tm * tn_ * itm         # output block
        b += 2 * tm * tn_ * 4           # g / u f32 temporaries
        return b

    tm = min(_round_up(512, sub), rows_base)
    while tm > sub and est(tm, tn) > _TILE_BUDGET:
        tm = max(sub, tm // 2)
    while est(tm, tn) > _TILE_BUDGET and tn > 256 and tn % 256 == 0 and N % (tn // 2) == 0:
        tn //= 2
    rows_pad = _round_up(rows, tm)
    xp = _pad2d(x, rows_pad, K)

    out = pl.pallas_call(
        functools.partial(_norm_swiglu_kernel, eps=eps, inv_dim=1.0 / K),
        out_shape=jax.ShapeDtypeStruct((rows_pad, N), dtype),
        grid=(rows_pad // tm, N // tn),
        in_specs=[pl.BlockSpec((tm, K), lambda i, j: (i, 0)),
                  pl.BlockSpec((1, K), lambda i, j: (0, 0)),
                  pl.BlockSpec((K, tn), lambda i, j: (0, j)),
                  pl.BlockSpec((K, tn), lambda i, j: (0, j))],
        out_specs=pl.BlockSpec((tm, tn), lambda i, j: (i, j)),
        scratch_shapes=[pltpu.VMEM((tm, K), dtype)],
        # the j axis must stay "arbitrary": the xn scratch is filled at j == 0
        compiler_params=_cparams("parallel", "arbitrary"),
    )(xp, gamma.reshape(1, K).astype(dtype), wg, wu)
    return out[:rows]


# ------------------------- flash attention (BSHD layout) -------------------------

def _flash_attn_kernel(q_ref, k_ref, v_ref, o_ref,
                       q_scr, m_scr, l_scr, acc_scr,
                       *, scale, n_rep, block_q, block_kv):
    qi = pl.program_id(1)
    ki = pl.program_id(2)

    @pl.when(ki == 0)
    def _():
        q = q_ref[0].astype(jnp.float32) * scale                      # (tq, Hq, D)
        q_scr[...] = jnp.swapaxes(q, 0, 1).astype(q_scr.dtype)        # (Hq, tq, D), input dtype
        m_scr[...] = jnp.full(m_scr.shape, _NEG_INF, m_scr.dtype)
        l_scr[...] = jnp.zeros_like(l_scr)
        acc_scr[...] = jnp.zeros_like(acc_scr)

    # Skip kv tiles that lie entirely above the causal diagonal.
    @pl.when(ki * block_kv <= qi * block_q + (block_q - 1))
    def _():
        k = jnp.swapaxes(k_ref[0], 0, 1)                              # (Hkv, tkv, D)
        v = jnp.swapaxes(v_ref[0], 0, 1)
        if n_rep > 1:                                                 # GQA: expand kv heads
            hkv, tkv, d = k.shape
            k = jnp.broadcast_to(k[:, None], (hkv, n_rep, tkv, d)).reshape(hkv * n_rep, tkv, d)
            v = jnp.broadcast_to(v[:, None], (hkv, n_rep, tkv, d)).reshape(hkv * n_rep, tkv, d)

        # scores stay in the input dtype on the MXU; accumulation is f32
        s = jax.lax.dot_general(q_scr[...], k, (((2,), (2,)), ((0,), (0,))),
                                preferred_element_type=jnp.float32)   # (Hq, tq, tkv)

        q_pos = qi * block_q + jax.lax.broadcasted_iota(jnp.int32, (block_q, block_kv), 0)
        k_pos = ki * block_kv + jax.lax.broadcasted_iota(jnp.int32, (block_q, block_kv), 1)
        s = jnp.where((q_pos >= k_pos)[None, :, :], s, _NEG_INF)      # causal mask, in-kernel

        m_prev = m_scr[...]
        m_new = jnp.maximum(m_prev, jnp.max(s, axis=-1, keepdims=True))
        alpha = jnp.exp(m_prev - m_new)
        p = jnp.exp(s - m_new)
        l_scr[...] = alpha * l_scr[...] + jnp.sum(p, axis=-1, keepdims=True)
        acc_scr[...] = alpha * acc_scr[...] + jax.lax.dot_general(
            p.astype(v.dtype), v, (((2,), (1,)), ((0,), (0,))),
            preferred_element_type=jnp.float32)
        m_scr[...] = m_new

    @pl.when(ki == pl.num_programs(2) - 1)
    def _():
        out = acc_scr[...] * pl.reciprocal(l_scr[...], approx=True)   # (Hq, tq, D)
        o_ref[0] = jnp.swapaxes(out, 0, 1).astype(o_ref.dtype)


def _attn_tiles(S, Hq, Hkv, D, dtype):
    itm = jnp.dtype(dtype).itemsize

    def est(t):
        b = 2 * t * Hq * D * itm            # q block
        b += 2 * 2 * t * Hkv * D * itm      # k and v blocks
        b += 2 * t * Hq * D * itm           # output block
        b += t * Hq * D * itm               # q scratch
        b += Hq * t * D * 4                 # f32 accumulator
        b += 2 * Hq * t * 128 * 4           # m / l scratch (lane-padded)
        b += 2 * Hq * t * t * 4             # score / prob temporaries
        b += 2 * Hq * t * D * itm           # repeated k / v temporaries
        return b

    t = 8
    for cand in (512, 256, 128, 64, 32, 16, 8):
        if est(cand) <= _TILE_BUDGET:
            t = cand
            break
    t = min(t, _round_up(S, 8))
    return t, _round_up(S, t)


def flash_attention(q, k, v):
    """q: (B,S,Hq,D), k/v: (B,S,Hkv,D). Causal mask generated in-kernel."""
    B, S, Hq, D = q.shape
    Hkv = k.shape[2]
    n_rep = Hq // Hkv
    t, s_pad = _attn_tiles(S, Hq, Hkv, D, q.dtype)
    if s_pad != S:
        pad = ((0, 0), (0, s_pad - S), (0, 0), (0, 0))
        q = jnp.pad(q, pad)
        k = jnp.pad(k, pad)
        v = jnp.pad(v, pad)
    scale = 1.0 / math.sqrt(D)

    out = pl.pallas_call(
        functools.partial(_flash_attn_kernel, scale=scale, n_rep=n_rep,
                          block_q=t, block_kv=t),
        out_shape=jax.ShapeDtypeStruct((B, s_pad, Hq, D), q.dtype),
        grid=(B, s_pad // t, s_pad // t),
        in_specs=[
            pl.BlockSpec((1, t, Hq, D), lambda b, qi, ki: (b, qi, 0, 0)),
            pl.BlockSpec((1, t, Hkv, D), lambda b, qi, ki: (b, ki, 0, 0)),
            pl.BlockSpec((1, t, Hkv, D), lambda b, qi, ki: (b, ki, 0, 0)),
        ],
        out_specs=pl.BlockSpec((1, t, Hq, D), lambda b, qi, ki: (b, qi, 0, 0)),
        scratch_shapes=[
            pltpu.VMEM((Hq, t, D), q.dtype),       # rotated/scaled q
            pltpu.VMEM((Hq, t, 1), jnp.float32),   # running max
            pltpu.VMEM((Hq, t, 1), jnp.float32),   # running sum
            pltpu.VMEM((Hq, t, D), jnp.float32),   # output accumulator
        ],
        compiler_params=_cparams("parallel", "parallel", "arbitrary"),
    )(q, k, v)
    return out[:, :S]


# -------------------------------- RoPE (wrapper) --------------------------------

def _rope_cos_sin(seq_len, head_dim, base, dtype):
    inv_freq = 1.0 / (base ** (jnp.arange(0, head_dim, 2, dtype=jnp.float32) / head_dim))
    t = jnp.arange(seq_len, dtype=jnp.float32)
    freqs = jnp.outer(t, inv_freq)
    emb = jnp.concatenate([freqs, freqs], axis=-1)
    return jnp.cos(emb).astype(dtype), jnp.sin(emb).astype(dtype)


def _rotate_half(x):
    half = x.shape[-1] // 2
    return jnp.concatenate([-x[..., half:], x[..., :half]], axis=-1)


def _apply_rope_bshd(q, k, cos, sin, position_ids):
    # TODO(synk): fuse the RoPE rotation into the flash-attention prologue
    # (pltpu.roll on the XLU slot) to remove this q/k HBM round-trip.
    cos = cos[position_ids][:, :, None, :]   # (B, S, 1, D)
    sin = sin[position_ids][:, :, None, :]
    q = q * cos + _rotate_half(q) * sin
    k = k * cos + _rotate_half(k) * sin
    return q, k


# ------------------------------ full decoder layer ------------------------------

def creek_decoder_layer(x, params, *, num_heads, num_kv_heads, eps, rope_theta,
                        position_ids):
    # TODO(synk): only the standard causal mask is supported (generated in-kernel);
    # arbitrary additive attention masks are not plumbed into the flash kernel.
    B, S, H = x.shape
    D = H // num_heads
    rows = B * S

    # 1) input RMSNorm -- its output is the residual stream in this layer
    h1 = rmsnorm(x, params["input_ln_w"], eps).reshape(rows, H)

    # 2) q / k / v projections (separate calls: no weight concat, no output slices)
    q = matmul(h1, params["wq"]).reshape(B, S, num_heads, D)
    k = matmul(h1, params["wk"]).reshape(B, S, num_kv_heads, D)
    v = matmul(h1, params["wv"]).reshape(B, S, num_kv_heads, D)

    # 3) RoPE (tiny elementwise op, kept in the wrapper)
    cos, sin = _rope_cos_sin(S, D, rope_theta, x.dtype)
    q, k = _apply_rope_bshd(q, k, cos, sin, position_ids)

    # 4) flash attention in (B, S, H, D) layout -- no XLA transposes
    attn = flash_attention(q, k, v).reshape(rows, H)

    # 5) o_proj fused with the first residual add
    h2 = matmul(attn, params["wo"], residual=h1)

    # 6) post-attention RMSNorm fused into gate/up projections + SwiGLU
    m = norm_swiglu(h2, params["post_ln_w"], params["wg"], params["wu"], eps)

    # 7) down_proj fused with the second residual add
    out = matmul(m, params["wd"], residual=h2)
    return out.reshape(B, S, H)


# --------------------------------- pure-JAX ref ---------------------------------

def decoder_layer_ref(x, params, *, num_heads, num_kv_heads, eps, rope_theta,
                      attention_mask, position_ids):
    B, S, H = x.shape
    D = H // num_heads
    n_rep = num_heads // num_kv_heads

    def rms(v, w):
        vf = v.astype(jnp.float32)
        ms = jnp.mean(vf * vf, axis=-1, keepdims=True)
        return (vf * jax.lax.rsqrt(ms + eps)).astype(v.dtype) * w.astype(v.dtype)

    h1 = rms(x, params["input_ln_w"])
    q = (h1.reshape(B * S, H) @ params["wq"]).reshape(B, S, num_heads, D)
    k = (h1.reshape(B * S, H) @ params["wk"]).reshape(B, S, num_kv_heads, D)
    v = (h1.reshape(B * S, H) @ params["wv"]).reshape(B, S, num_kv_heads, D)
    cos, sin = _rope_cos_sin(S, D, rope_theta, x.dtype)
    q, k = _apply_rope_bshd(q, k, cos, sin, position_ids)
    q = q.transpose(0, 2, 1, 3)
    k = k.transpose(0, 2, 1, 3)
    v = v.transpose(0, 2, 1, 3)
    k = jnp.repeat(k, n_rep, axis=1)
    v = jnp.repeat(v, n_rep, axis=1)
    s = jnp.einsum("bhqd,bhkd->bhqk", q, k) / math.sqrt(D)
    s = s + attention_mask
    p = jax.nn.softmax(s.astype(jnp.float32), axis=-1).astype(q.dtype)
    o = jnp.einsum("bhqk,bhkd->bhqd", p, v)
    o = o.transpose(0, 2, 1, 3).reshape(B, S, H)
    h2 = h1 + o @ params["wo"]
    h3 = rms(h2, params["post_ln_w"])
    m = jax.nn.silu(h3 @ params["wg"]) * (h3 @ params["wu"])
    return h2 + m @ params["wd"]


if __name__ == "__main__":
    key = jax.random.PRNGKey(0)
    batch, seq, hidden = 2, 8, 32
    num_heads, num_kv_heads = 4, 2
    head_dim = hidden // num_heads
    intermediate = 64
    eps = 1e-6
    rope_theta = 10000.0
    dtype = jnp.float32

    keys = jax.random.split(key, 8)
    x = jax.random.normal(keys[0], (batch, seq, hidden), dtype=dtype)
    scale = 0.08
    params = {
        "input_ln_w": jnp.ones((hidden,), dtype=dtype),
        "post_ln_w": jnp.ones((hidden,), dtype=dtype),
        "wq": scale * jax.random.normal(keys[1], (hidden, num_heads * head_dim), dtype=dtype),
        "wk": scale * jax.random.normal(keys[2], (hidden, num_kv_heads * head_dim), dtype=dtype),
        "wv": scale * jax.random.normal(keys[3], (hidden, num_kv_heads * head_dim), dtype=dtype),
        "wo": scale * jax.random.normal(keys[4], (num_heads * head_dim, hidden), dtype=dtype),
        "wg": scale * jax.random.normal(keys[5], (hidden, intermediate), dtype=dtype),
        "wu": scale * jax.random.normal(keys[6], (hidden, intermediate), dtype=dtype),
        "wd": scale * jax.random.normal(keys[7], (intermediate, hidden), dtype=dtype),
    }

    position_ids = jnp.broadcast_to(jnp.arange(seq, dtype=jnp.int32), (batch, seq))
    causal = jnp.tril(jnp.ones((seq, seq), dtype=bool))
    attention_mask = jnp.where(causal, 0.0, -1e9).astype(dtype)[None, None, :, :]
    attention_mask = jnp.broadcast_to(attention_mask, (batch, 1, seq, seq))

    out = creek_decoder_layer(
        x, params, num_heads=num_heads, num_kv_heads=num_kv_heads, eps=eps,
        rope_theta=rope_theta, position_ids=position_ids)
    out = jax.block_until_ready(out)

    ref = decoder_layer_ref(
        x, params, num_heads=num_heads, num_kv_heads=num_kv_heads, eps=eps,
        rope_theta=rope_theta, attention_mask=attention_mask, position_ids=position_ids)
    ref = jax.block_until_ready(ref)

    assert out.shape == x.shape and out.dtype == x.dtype
    max_err = float(jnp.max(jnp.abs(out - ref)))
    assert jnp.allclose(out, ref, atol=2e-3, rtol=2e-3), max_err

    print("KERNEL_OK")
</pallas_src>

<mosaic_0001>
module attributes {stable_mosaic.version = 11 : i64} {
  func.func @_rmsnorm_kernel(%arg0: i32, %arg1: memref<16x32xf32, #tpu.memory_space<vmem>>, %arg2: memref<1x32xf32, #tpu.memory_space<vmem>>, %arg3: memref<16x32xf32, #tpu.memory_space<vmem>>) attributes {dimension_semantics = [#tpu.dimension_semantics<parallel>], iteration_bounds = array<i64: 1>, scalar_prefetch = 0 : i64, scratch_operands = 0 : i64, tpu.core_type = #tpu.core_type<tc>, window_params = [{transform_indices = @transform_0, window_bounds = array<i64: 16, 32>}, {pipeline_mode = #tpu.pipeline_mode<synchronous>, transform_indices = @transform_1, window_bounds = array<i64: 1, 32>}, {transform_indices = @transform_2, window_bounds = array<i64: 16, 32>}]} {
    %c0 = arith.constant 0 : index
    %c0_0 = arith.constant 0 : index
    %0 = vector.load %arg1[%c0, %c0_0] : memref<16x32xf32, #tpu.memory_space<vmem>>, vector<16x32xf32>
    %1 = arith.mulf %0, %0 : vector<16x32xf32>
    %cst = arith.constant dense<0.000000e+00> : vector<16xf32>
    %2 = vector.multi_reduction <add>, %1, %cst [1] : vector<16x32xf32> to vector<16xf32>
    %3 = vector.shape_cast %2 : vector<16xf32> to vector<16x1xf32>
    %cst_1 = arith.constant 3.125000e-02 : f32
    %4 = vector.broadcast %cst_1 : f32 to vector<16x1xf32>
    %5 = arith.mulf %3, %4 : vector<16x1xf32>
    %cst_2 = arith.constant 9.99999997E-7 : f32
    %6 = vector.broadcast %cst_2 : f32 to vector<16x1xf32>
    %7 = arith.addf %5, %6 : vector<16x1xf32>
    %8 = math.rsqrt %7 : vector<16x1xf32>
    %9 = vector.broadcast %8 : vector<16x1xf32> to vector<16x32xf32>
    %10 = arith.mulf %0, %9 : vector<16x32xf32>
    %c0_3 = arith.constant 0 : index
    %c0_4 = arith.constant 0 : index
    %11 = vector.load %arg2[%c0_3, %c0_4] : memref<1x32xf32, #tpu.memory_space<vmem>>, vector<1x32xf32>
    %12 = vector.broadcast %11 : vector<1x32xf32> to vector<16x32xf32>
    %13 = arith.mulf %10, %12 : vector<16x32xf32>
    %c0_5 = arith.constant 0 : index
    %c0_6 = arith.constant 0 : index
    %14 = vector.load %arg3[%c0_5, %c0_6] : memref<16x32xf32, #tpu.memory_space<vmem>>, vector<16x32xf32>
    tpu.vector_store %arg3[%c0_5, %c0_6], %13 {strides = array<i32>} : memref<16x32xf32, #tpu.memory_space<vmem>>, vector<16x32xf32>,
    return
  }
  func.func @transform_0(%arg0: i32) -> (i32, i32) {
    %c0_i32 = arith.constant 0 : i32
    %c0_i32_0 = arith.constant 0 : i32
    return %arg0, %c0_i32 : i32, i32
  }
  func.func @transform_1(%arg0: i32) -> (i32, i32) {
    %c0_i32 = arith.constant 0 : i32
    %c0_i32_0 = arith.constant 0 : i32
    %c0_i32_1 = arith.constant 0 : i32
    return %c0_i32, %c0_i32_0 : i32, i32
  }
  func.func @transform_2(%arg0: i32) -> (i32, i32) {
    %c0_i32 = arith.constant 0 : i32
    %c0_i32_0 = arith.constant 0 : i32
    return %arg0, %c0_i32 : i32, i32
  }
}

</mosaic_0001>

<bundles_post_ra>
// kernel: tpu_custom_call.1
= control target key start
LH: loop header
LB: loop body
LE: loop exit
PB: predicated region body
PF: predicated region fallthrough
CT: control target
= control target key end

     0   :  { %7 = vsyncpa [#allocation3], 0  ;;  %s164_s0 = inlined_call_operand.hbm [shape: f32[16,32], index: 0, kind: input, shape index: {}]   ;;  %s165_s1 = inlined_call_operand.vmem [shape: f32[1,32], index: 1, kind: input, shape index: {}]   ;;  %s166_s2 = inlined_call_operand.hbm [shape: f32[16,32], index: 2, kind: output, shape index: {}]  }
   0x1   :  { %8 = vsyncpa [#allocation4], 0  ;;  %s126_s9 = smov [#allocation2]  }
   0x2   :  { %s14_s10 = sshll.u32 %s126_s9, 4  ;;  %s15_s10 = int_to_ptr.vmem [resolvable:$true] %s14_s10 }
   0x3   :  { %s90_s11 = scalar_lea.vmem %s15_s10, 256  ;;  %p95_p1 = scmp.lt.s32.totalorder %s15_s10, %s15_s10 }
   0x4   :  { %p91_p0 = scmp.ne.s32.totalorder %s15_s10, %s90_s11  ;;  %p96_p2 = scmp.lt.s32.totalorder %s90_s11, %s90_s11 }
   0x6   :  { %p97_p3 = por %p96_p2, %p95_p1 }
   0x8   :  { %p98_p4 = pnand %p97_p3, %p91_p0 }
   0xa   :  { %101 = shalt.err (!%p98_p4)
}
   0xb   :  { %s127_s12 = smov 128   ;;  %s128_s13 = smov 8  }
   0xc   :  { %20 = dma.hbm_to_vmem [thread:$0]  %s164_s0, 256, %s15_s10, [#allocation3], %s127_s12, %s127_s12, %s128_s13  }
   0xd   :  { %122 = dma.done.wait [#allocation3], 256  }
   0xe   :  { %123 = vsyncadd [#allocation3], 4294967040  ;;  %v26_v0 = vld [vmem:[#allocation2] sm:$0xff]  ;;  %vm30_vm0 = vcmask 261120   ;;  %v27_v1 = vld [vmem:[#allocation2 + $0x8] sm:$0xff]  ;;  %s129_s17 = smov [#allocation5]  }
   0xf   :  { %v28_v2 = vmul.f32 %v26_v0, %v26_v0  ;;  %v29_v3 = vmul.f32 %v27_v1, %v27_v1  ;;  %v73_v13 = vld [vmem:[%s165_s1] ss:$0 sm:$0xff]  ;;  %s61_s18 = sshll.u32 %s129_s17, 4  ;;  %s62_s18 = int_to_ptr.vmem [resolvable:$true] %s61_s18 }
  0x10   :  { %s102_s19 = scalar_lea.vmem %s62_s18, 256  ;;  %p107_p6 = scmp.lt.s32.totalorder %s62_s18, %s62_s18 }
  0x11   :  { %v31_v4 = vsel %vm30_vm0, %v28_v2, 0.0  ;;  %v34_v5 = vsel %vm30_vm0, %v29_v3, 0.0  ;;  %p103_p5 = scmp.ne.s32.totalorder %s62_s18, %s102_s19  ;;  %p108_p7 = scmp.lt.s32.totalorder %s102_s19, %s102_s19 }
  0x12   :  { %32 = vadd.xlane.f32.xlu0 %v31_v4 }
  0x13   :  { %p109_p8 = por %p108_p7, %p107_p6 }
  0x15   :  { %p110_p9 = pnand %p109_p8, %p103_p5 }
  0x16   :  { %35 = vadd.xlane.f32.xlu0 %v34_v5 }
  0x9b   :  { %v33_v6 = vpop.xlane.xlu0 %32 }
  0x9c   :  { %v37_v7 = vmul.f32 0.03125, %v33_v6 }
  0x9e   :  { %v39_v8 = vadd.f32 1e-06, %v37_v7 }
  0x9f   :  { %v36_v9 = vpop.xlane.xlu0 %35 }
  0xa0   :  { %78 = vrsqrt.f32 %v39_v8  ;;  %v38_v10 = vmul.f32 0.03125, %v36_v9 }
  0xa2   :  { %v40_v11 = vadd.f32 1e-06, %v38_v10 }
  0xa4   :  { %80 = vrsqrt.f32 %v40_v11 }
  0xad   :  { %v79_v12 = vpop.eup %78 }
  0xae   :  { %v43_v14 = vmul.f32 %v79_v12, %v26_v0 }
  0xb0   :  { %v52_v15 = vmul.f32 %v73_v13, %v43_v14 }
  0xb1   :  { %v81_v16 = vpop.eup %80 }
  0xb2   :  { %v44_v17 = vmul.f32 %v81_v16, %v27_v1  ;;  %54 = vst.msk [vmem:[#allocation5] sm:$0xff] %vm30_vm0, %v52_v15 }
  0xb4   :  { %v53_v18 = vmul.f32 %v73_v13, %v44_v17 }
  0xb6   :  { %55 = vst.msk [vmem:[#allocation5 + $0x8] sm:$0xff] %vm30_vm0, %v53_v18 }
  0xb7   :  { %113 = shalt.err (!%p110_p9)
}
  0xb8   :  { %67 = dma.vmem_to_hbm [thread:$0]  %s62_s18, 256, %s166_s2, [#allocation4], %s127_s12, %s127_s12, %s128_s13  }
  0xb9   :  { %124 = dma.done.wait [#allocation4], 256  }
  0xba   :  { %125 = vsyncadd [#allocation4], 4294967040 }
  0xbb   :  { %71 = vsyncpa [#allocation3], 1 }
  0xbc   :  { %72 = vsyncpa [#allocation4], 1 }

</bundles_post_ra>
